<compile_context>
chip_gen: v5e
topology: v5e:2x2
jax: 0.10.0
libtpu: 0.0.40
codegen_flags: <defaults>
</compile_context>

<pallas_src>
import functools

import jax
import jax.numpy as jnp
from jax import lax
from jax.experimental import pallas as pl
from jax.experimental.pallas import tpu as pltpu


def _round_up(n, m):
    return ((n + m - 1) // m) * m


def _vmem_capacity_bytes():
    try:
        return int(pltpu.get_tpu_info().vmem_capacity_bytes)
    except Exception:
        return 64 * 1024 * 1024  # v7x per-TC floor; safe lower bound everywhere


def _vmem_limit(estimate_bytes):
    cap = _vmem_capacity_bytes()
    return int(min(cap, max(32 * 1024 * 1024, 2 * estimate_bytes)))


# ---------------------------------------------------------------------------
# Stage 1: fused QKV projection, gridded over row tiles ("parallel").
# ---------------------------------------------------------------------------
def _qkv_proj_kernel(x_ref, w_ref, q_ref, k_ref, v_ref):
    d_pad = q_ref.shape[1]
    # (TS, D_pad) @ (D_pad, 3*D_pad) -> (TS, 3*D_pad), f32 accumulation.
    qkv = jnp.dot(x_ref[...], w_ref[...], preferred_element_type=jnp.float32)
    # Early downcast to the input dtype (bf16 callers get bf16 MXU feeds in
    # stage 2 and half the VMEM/HBM footprint for q/k/v).
    q_ref[...] = qkv[:, 0:d_pad].astype(q_ref.dtype)
    k_ref[...] = qkv[:, d_pad:2 * d_pad].astype(k_ref.dtype)
    v_ref[...] = qkv[:, 2 * d_pad:3 * d_pad].astype(v_ref.dtype)


# ---------------------------------------------------------------------------
# Stage 2: masked softmax attention, gridded over query tiles ("parallel").
# ---------------------------------------------------------------------------
def _attn_body(q_ref, k_ref, v_ref, o_ref, mask_ref, *, n_valid_keys):
    in_dt = q_ref.dtype
    # similarities = q @ k^T, contracting last dims (no transpose); operands in
    # the input dtype, f32 accumulation from preferred_element_type.
    sims = lax.dot_general(
        q_ref[...], k_ref[...],
        dimension_numbers=(((1,), (1,)), ((), ())),
        preferred_element_type=jnp.float32)

    neg = jnp.float32(-1000000000.0)
    # torch.masked_fill semantics: nonzero mask -> -1e9.
    if mask_ref is not None:
        sims = jnp.where(mask_ref[...] != 0, neg, sims)
    # Padded key columns (S_pad != S) masked in-kernel: pure VALU iota+compare,
    # no mask DMA needed on the unmasked path.
    if n_valid_keys is not None:
        key_idx = lax.broadcasted_iota(jnp.int32, sims.shape, 1)
        sims = jnp.where(key_idx >= n_valid_keys, neg, sims)

    # Softmax over keys, kept in f32; reciprocal on the EUP.
    m = jnp.max(sims, axis=1, keepdims=True)
    e = jnp.exp(sims - m)
    p = e * pl.reciprocal(jnp.sum(e, axis=1, keepdims=True), approx=True)

    # attention_scores = attention_percents @ v (input-dtype MXU feeds).
    out = jnp.dot(p.astype(in_dt), v_ref[...], preferred_element_type=jnp.float32)
    o_ref[...] = out.astype(o_ref.dtype)


def _attn_kernel_nomask(q_ref, k_ref, v_ref, o_ref, *, n_valid_keys):
    _attn_body(q_ref, k_ref, v_ref, o_ref, None, n_valid_keys=n_valid_keys)


def _attn_kernel_mask(q_ref, k_ref, v_ref, mask_ref, o_ref, *, n_valid_keys):
    _attn_body(q_ref, k_ref, v_ref, o_ref, mask_ref, n_valid_keys=n_valid_keys)


# ---------------------------------------------------------------------------
# Wrapper
# ---------------------------------------------------------------------------
def prepare_fused_weights(w_q, w_k, w_v):
    """Build the fused (D_pad, 3*D_pad) projection operand.

    Folds the 1/sqrt(d_model) softmax scale into W_q, transposes the PyTorch
    (out, in) weights to (in, out), and zero-pads to lane-dense shapes.
    Hoist out of the per-call path: call once per weight set and reuse.
    """
    d_out, d_in = w_q.shape
    w_dtype = w_q.dtype
    d_pad = _round_up(max(d_in, 128), 128)
    scale = 1.0 / (float(d_in) ** 0.5)
    wq_t = (w_q.astype(jnp.float32) * scale).astype(w_dtype).T
    wk_t = w_k.T
    wv_t = w_v.T
    w_fused = jnp.zeros((d_pad, 3 * d_pad), dtype=w_dtype)
    w_fused = w_fused.at[:d_in, 0:d_out].set(wq_t)
    w_fused = w_fused.at[:d_in, d_pad:d_pad + d_out].set(wk_t)
    w_fused = w_fused.at[:d_in, 2 * d_pad:2 * d_pad + d_out].set(wv_t)
    return w_fused


def masked_attention(token_encodings, w_q=None, w_k=None, w_v=None, mask=None,
                     *, w_fused=None):
    """Pallas equivalent of MaskedAttention.forward (2-D input, row_dim=0, col_dim=1).

    w_q / w_k / w_v are in PyTorch Linear convention (out_features, in_features).
    mask: (S, S) bool/int array, nonzero == masked (torch.masked_fill semantics).
    Pass a precomputed `w_fused` (from prepare_fused_weights) to skip the
    per-call weight preparation.
    """
    x = token_encodings
    S, D = x.shape
    in_dt = x.dtype
    out_dtype = x.dtype

    if w_fused is None:
        w_fused = prepare_fused_weights(w_q, w_k, w_v)
    D_pad = w_fused.shape[0]

    # Row / query tiling: lane- and sublane-dense, 256-row tiles when possible
    # (fills the 256x256 MXU on v6e/v7x); smaller S uses a single tile.
    S_pad = _round_up(max(S, 8), 8)
    if S_pad > 256:
        S_pad = _round_up(S_pad, 256)
        TS = 256
    else:
        TS = S_pad
    n_tiles = S_pad // TS

    itemsize = jnp.dtype(in_dt).itemsize
    w_itemsize = jnp.dtype(w_fused.dtype).itemsize
    out_itemsize = jnp.dtype(out_dtype).itemsize

    x_pad = jnp.zeros((S_pad, D_pad), dtype=in_dt).at[:S, :D].set(x)

    # ---------------- Stage 1: fused QKV projection ----------------
    proj_cost = pl.CostEstimate(
        flops=2 * S_pad * D_pad * 3 * D_pad,
        transcendentals=0,
        bytes_accessed=(S_pad * D_pad * itemsize
                        + D_pad * 3 * D_pad * w_itemsize
                        + 3 * S_pad * D_pad * itemsize))
    proj_vmem = (2 * TS * D_pad * itemsize            # x tiles (double-buffered)
                 + 2 * D_pad * 3 * D_pad * w_itemsize  # resident w_fused
                 + 2 * 3 * TS * D_pad * itemsize       # q/k/v output tiles
                 + TS * 3 * D_pad * 4)                 # f32 qkv intermediate

    q, k, v = pl.pallas_call(
        _qkv_proj_kernel,
        out_shape=tuple(jax.ShapeDtypeStruct((S_pad, D_pad), in_dt) for _ in range(3)),
        grid=(n_tiles,),
        in_specs=[
            pl.BlockSpec((TS, D_pad), lambda i: (i, 0)),
            pl.BlockSpec((D_pad, 3 * D_pad), lambda i: (0, 0)),  # resident
        ],
        out_specs=tuple(pl.BlockSpec((TS, D_pad), lambda i: (i, 0)) for _ in range(3)),
        compiler_params=pltpu.CompilerParams(
            dimension_semantics=("parallel",),
            vmem_limit_bytes=_vmem_limit(proj_vmem)),
        cost_estimate=proj_cost,
    )(x_pad, w_fused)

    # ---------------- Stage 2: attention over query tiles ----------------
    n_valid_keys = S if S_pad != S else None

    operands = [q, k, v]
    in_specs = [
        pl.BlockSpec((TS, D_pad), lambda i: (i, 0)),      # q tile
        pl.BlockSpec((S_pad, D_pad), lambda i: (0, 0)),   # k resident
        pl.BlockSpec((S_pad, D_pad), lambda i: (0, 0)),   # v resident
    ]
    mask_bytes = 0
    if mask is not None:
        # int8 mask: 4x less HBM/VMEM than int32; padded key columns are
        # handled in-kernel via iota, so only the user mask is stored.
        m_pad = jnp.zeros((S_pad, S_pad), dtype=jnp.int8)
        m_pad = m_pad.at[:S, :S].set(mask.astype(jnp.int8))
        operands.append(m_pad)
        in_specs.append(pl.BlockSpec((TS, S_pad), lambda i: (i, 0)))
        mask_bytes = S_pad * S_pad
        kernel = functools.partial(_attn_kernel_mask, n_valid_keys=n_valid_keys)
    else:
        kernel = functools.partial(_attn_kernel_nomask, n_valid_keys=n_valid_keys)

    attn_cost = pl.CostEstimate(
        flops=4 * S_pad * S_pad * D_pad,
        transcendentals=S_pad * S_pad,
        bytes_accessed=(3 * S_pad * D_pad * itemsize
                        + S_pad * D_pad * out_itemsize
                        + mask_bytes))
    attn_vmem = (2 * TS * D_pad * itemsize             # q tiles
                 + 2 * 2 * S_pad * D_pad * itemsize    # resident k, v
                 + 2 * TS * D_pad * out_itemsize       # out tiles
                 + (2 * TS * S_pad if mask is not None else 0)   # int8 mask tiles
                 + 4 * TS * S_pad * 4)                 # f32 sims/e/p + margin

    out_pad = pl.pallas_call(
        kernel,
        out_shape=jax.ShapeDtypeStruct((S_pad, D_pad), out_dtype),
        grid=(n_tiles,),
        in_specs=in_specs,
        out_specs=pl.BlockSpec((TS, D_pad), lambda i: (i, 0)),
        compiler_params=pltpu.CompilerParams(
            dimension_semantics=("parallel",),
            vmem_limit_bytes=_vmem_limit(attn_vmem)),
        cost_estimate=attn_cost,
    )(*operands)

    return out_pad[:S, :D]


# ---------------------------------------------------------------------------
# Reference + self-test
# ---------------------------------------------------------------------------
def _reference(token_encodings, w_q, w_k, w_v, mask=None):
    x = token_encodings.astype(jnp.float32)
    q = x @ w_q.astype(jnp.float32).T
    k = x @ w_k.astype(jnp.float32).T
    v = x @ w_v.astype(jnp.float32).T
    sims = q @ k.T
    scaled = sims / jnp.sqrt(jnp.float32(k.shape[1]))
    if mask is not None:
        scaled = jnp.where(mask, -1000000000.0, scaled)
    p = jax.nn.softmax(scaled, axis=1)
    return p @ v


if __name__ == "__main__":
    seq, d_model = 8, 32

    key = jax.random.PRNGKey(0)
    kx, kq, kk, kv = jax.random.split(key, 4)

    # Deterministic init (PyTorch Linear default: U(-1/sqrt(in), 1/sqrt(in)))
    bound = 1.0 / (d_model ** 0.5)
    x = jax.random.normal(kx, (seq, d_model), dtype=jnp.float32)
    w_q = jax.random.uniform(kq, (d_model, d_model), jnp.float32, -bound, bound)
    w_k = jax.random.uniform(kk, (d_model, d_model), jnp.float32, -bound, bound)
    w_v = jax.random.uniform(kv, (d_model, d_model), jnp.float32, -bound, bound)

    # Hoisted weight preparation (done once, reused across calls).
    w_fused = prepare_fused_weights(w_q, w_k, w_v)

    # Causal mask: True above the diagonal (positions to mask out)
    causal_mask = jnp.triu(jnp.ones((seq, seq), dtype=jnp.bool_), k=1)

    # Masked case (tolerance relaxed slightly for approx reciprocal in softmax)
    out_masked = jax.block_until_ready(
        masked_attention(x, w_q, w_k, w_v, causal_mask, w_fused=w_fused))
    ref_masked = _reference(x, w_q, w_k, w_v, causal_mask)
    assert out_masked.shape == ref_masked.shape
    assert jnp.allclose(out_masked, ref_masked, atol=2e-2, rtol=2e-2), (
        float(jnp.max(jnp.abs(out_masked - ref_masked))))

    # Unmasked case (mask=None -> specialized kernel, no mask DMA / no where)
    out_plain = jax.block_until_ready(
        masked_attention(x, w_q, w_k, w_v, None, w_fused=w_fused))
    ref_plain = _reference(x, w_q, w_k, w_v, None)
    assert out_plain.shape == ref_plain.shape
    assert jnp.allclose(out_plain, ref_plain, atol=2e-2, rtol=2e-2), (
        float(jnp.max(jnp.abs(out_plain - ref_plain))))

    # Non-multiple-of-8 sequence length (exercises in-kernel iota key masking)
    seq2 = 13
    x2 = jax.random.normal(jax.random.PRNGKey(1), (seq2, d_model), dtype=jnp.float32)
    out_ragged = jax.block_until_ready(
        masked_attention(x2, w_q, w_k, w_v, None, w_fused=w_fused))
    ref_ragged = _reference(x2, w_q, w_k, w_v, None)
    assert out_ragged.shape == ref_ragged.shape
    assert jnp.allclose(out_ragged, ref_ragged, atol=2e-2, rtol=2e-2), (
        float(jnp.max(jnp.abs(out_ragged - ref_ragged))))

    print("KERNEL_OK")
</pallas_src>

<mosaic_0001>
module attributes {stable_mosaic.version = 11 : i64} {
  func.func @_qkv_proj_kernel(%arg0: i32, %arg1: memref<8x128xf32, #tpu.memory_space<vmem>>, %arg2: memref<128x384xf32, #tpu.memory_space<vmem>>, %arg3: memref<8x128xf32, #tpu.memory_space<vmem>>, %arg4: memref<8x128xf32, #tpu.memory_space<vmem>>, %arg5: memref<8x128xf32, #tpu.memory_space<vmem>>) attributes {dimension_semantics = [#tpu.dimension_semantics<parallel>], iteration_bounds = array<i64: 1>, scalar_prefetch = 0 : i64, scratch_operands = 0 : i64, tpu.core_type = #tpu.core_type<tc>, window_params = [{transform_indices = @transform_0, window_bounds = array<i64: 8, 128>}, {pipeline_mode = #tpu.pipeline_mode<synchronous>, transform_indices = @transform_1, window_bounds = array<i64: 128, 384>}, {transform_indices = @transform_2, window_bounds = array<i64: 8, 128>}, {transform_indices = @transform_3, window_bounds = array<i64: 8, 128>}, {transform_indices = @transform_4, window_bounds = array<i64: 8, 128>}]} {
    %c0 = arith.constant 0 : index
    %c0_0 = arith.constant 0 : index
    %0 = vector.load %arg1[%c0, %c0_0] : memref<8x128xf32, #tpu.memory_space<vmem>>, vector<8x128xf32>
    %c0_1 = arith.constant 0 : index
    %c0_2 = arith.constant 0 : index
    %1 = vector.load %arg2[%c0_1, %c0_2] : memref<128x384xf32, #tpu.memory_space<vmem>>, vector<128x384xf32>
    %cst = arith.constant dense<0.000000e+00> : vector<8x384xf32>
    %2 = tpu.matmul %0, %1, %cst {dimension_numbers = #tpu.dot_dimension_numbers<[1], [0], [0], [1], [0, 0, 1, 1], [], []>} : vector<8x128xf32>, vector<128x384xf32>, vector<8x384xf32> -> vector<8x384xf32>
    %3 = vector.extract_strided_slice %2 {offsets = [0, 0], sizes = [8, 128], strides = [1, 1]} : vector<8x384xf32> to vector<8x128xf32>
    %c0_3 = arith.constant 0 : index
    %c0_4 = arith.constant 0 : index
    %4 = vector.load %arg3[%c0_3, %c0_4] : memref<8x128xf32, #tpu.memory_space<vmem>>, vector<8x128xf32>
    tpu.vector_store %arg3[%c0_3, %c0_4], %3 {strides = array<i32>} : memref<8x128xf32, #tpu.memory_space<vmem>>, vector<8x128xf32>,
    %5 = vector.extract_strided_slice %2 {offsets = [0, 128], sizes = [8, 128], strides = [1, 1]} : vector<8x384xf32> to vector<8x128xf32>
    %c0_5 = arith.constant 0 : index
    %c0_6 = arith.constant 0 : index
    %6 = vector.load %arg4[%c0_5, %c0_6] : memref<8x128xf32, #tpu.memory_space<vmem>>, vector<8x128xf32>
    tpu.vector_store %arg4[%c0_5, %c0_6], %5 {strides = array<i32>} : memref<8x128xf32, #tpu.memory_space<vmem>>, vector<8x128xf32>,
    %7 = vector.extract_strided_slice %2 {offsets = [0, 256], sizes = [8, 128], strides = [1, 1]} : vector<8x384xf32> to vector<8x128xf32>
    %c0_7 = arith.constant 0 : index
    %c0_8 = arith.constant 0 : index
    %8 = vector.load %arg5[%c0_7, %c0_8] : memref<8x128xf32, #tpu.memory_space<vmem>>, vector<8x128xf32>
    tpu.vector_store %arg5[%c0_7, %c0_8], %7 {strides = array<i32>} : memref<8x128xf32, #tpu.memory_space<vmem>>, vector<8x128xf32>,
    return
  }
  func.func @transform_0(%arg0: i32) -> (i32, i32) {
    %c0_i32 = arith.constant 0 : i32
    %c0_i32_0 = arith.constant 0 : i32
    return %arg0, %c0_i32 : i32, i32
  }
  func.func @transform_1(%arg0: i32) -> (i32, i32) {
    %c0_i32 = arith.constant 0 : i32
    %c0_i32_0 = arith.constant 0 : i32
    %c0_i32_1 = arith.constant 0 : i32
    return %c0_i32, %c0_i32_0 : i32, i32
  }
  func.func @transform_2(%arg0: i32) -> (i32, i32) {
    %c0_i32 = arith.constant 0 : i32
    %c0_i32_0 = arith.constant 0 : i32
    return %arg0, %c0_i32 : i32, i32
  }
  func.func @transform_3(%arg0: i32) -> (i32, i32) {
    %c0_i32 = arith.constant 0 : i32
    %c0_i32_0 = arith.constant 0 : i32
    return %arg0, %c0_i32 : i32, i32
  }
  func.func @transform_4(%arg0: i32) -> (i32, i32) {
    %c0_i32 = arith.constant 0 : i32
    %c0_i32_0 = arith.constant 0 : i32
    return %arg0, %c0_i32 : i32, i32
  }
}

</mosaic_0001>

<bundles_post_ra>
// kernel: tpu_custom_call.1
= control target key start
LH: loop header
LB: loop body
LE: loop exit
PB: predicated region body
PF: predicated region fallthrough
CT: control target
= control target key end

     0   :  { %10 = vsyncpa [#allocation3], 0  ;;  %s389_s0 = inlined_call_operand.hbm [shape: f32[8,128], index: 0, kind: input, shape index: {}]   ;;  %s390_s1 = inlined_call_operand.hbm [shape: f32[128,384], index: 1, kind: input, shape index: {}]   ;;  %s391_s2 = inlined_call_operand.hbm [shape: f32[8,128], index: 2, kind: output, shape index: {0}]   ;;  %s392_s3 = inlined_call_operand.hbm [shape: f32[8,128], index: 3, kind: output, shape index: {1}]   ;;  %s393_s4 = inlined_call_operand.hbm [shape: f32[8,128], index: 4, kind: output, shape index: {2}]  }
   0x1   :  { %11 = vsyncpa [#allocation6], 0 }
   0x2   :  { %12 = vsyncpa [#allocation4], 0 }
   0x3   :  { %13 = vsyncpa [#allocation9], 0  ;;  %s19_s17 = sshll.u32 %s389_s0, 4  ;;  %s342_s18 = smov [#allocation2]   ;;  %s20_s17 = int_to_ptr.hbm [resolvable:$true] %s19_s17 }
   0x4   :  { %s21_s19 = sshll.u32 %s342_s18, 4  ;;  %s29_s22 = sshll.u32 %s390_s1, 4  ;;  %s22_s19 = int_to_ptr.vmem [resolvable:$true] %s21_s19  ;;  %s30_s22 = int_to_ptr.hbm [resolvable:$true] %s29_s22 }
   0x5   :  { %24 = dma.hbm_to_vmem [thread:$0]  %s20_s17, 128, %s22_s19, [#allocation3]  }
   0x6   :  { %s343_s23 = smov [#allocation5]   ;;  %s344_s25 = smov 384  }
   0x7   :  { %s31_s24 = sshll.u32 %s343_s23, 4  ;;  %s345_s26 = smov 24   ;;  %s32_s24 = int_to_ptr.vmem [resolvable:$true] %s31_s24 }
   0x8   :  { %37 = dma.hbm_to_vmem [thread:$0]  %s30_s22, 6144, %s32_s24, [#allocation6], %s344_s25, %s344_s25, %s345_s26  }
   0x9   :  { %334 = dma.done.wait [#allocation3], 128  }
   0xa   :  { %335 = vsyncadd [#allocation3], 4294967168 }
   0xb   :  { %336 = dma.done.wait [#allocation6], 6144  }
   0xc   :  { %337 = vsyncadd [#allocation6], 4294961152  ;;  %v94_v0 = vld [vmem:[#allocation5 + $0x178] sm:$0xff]  ;;  %v91_v1 = vld [vmem:[#allocation5 + $0x160] sm:$0xff]  ;;  %s346_s0 = smov [#allocation8]   ;;  %s176_s29 = sshll.u32 %s392_s3, 4  ;;  %s177_s29 = int_to_ptr.hbm [resolvable:$true] %s176_s29 }
   0xd   :  { %135 = vmatpush.msra.mxu2 %v94_v0  ;;  %v93_v2 = vld [vmem:[#allocation5 + $0x170] sm:$0xff]  ;;  %v92_v3 = vld [vmem:[#allocation5 + $0x168] sm:$0xff]  ;;  %v90_v5 = vld [vmem:[#allocation5 + $0x158] sm:$0xff]  ;;  %s174_s1 = sshll.u32 %s346_s0, 4  ;;  %s347_s30 = smov [#allocation7]   ;;  %s175_s1 = int_to_ptr.vmem [resolvable:$true] %s174_s1 }
   0xe   :  { %v88_v4 = vld [vmem:[#allocation5 + $0x148] sm:$0xff]  ;;  %115 = vmatpush.msra.mxu1 %v93_v2  ;;  %95 = vmatpush.msra.mxu0 %v92_v3  ;;  %v89_v6 = vld [vmem:[#allocation5 + $0x150] sm:$0xff]  ;;  %v87_v7 = vld [vmem:[#allocation5 + $0x140] sm:$0xff]  ;;  %s163_s5 = sshll.u32 %s347_s30, 4  ;;  %s165_s8 = sshll.u32 %s391_s2, 4  ;;  %s164_s5 = int_to_ptr.vmem [resolvable:$true] %s163_s5  ;;  %s166_s8 = int_to_ptr.hbm [resolvable:$true] %s165_s8 }
   0xf   :  { %136 = vmatpush.msra.mxu2 %v91_v1  ;;  %v86_v8 = vld [vmem:[#allocation5 + $0x138] sm:$0xff]  ;;  %v85_v9 = vld [vmem:[#allocation5 + $0x130] sm:$0xff]  ;;  %v84_v10 = vld [vmem:[#allocation5 + $0x128] sm:$0xff]  ;;  %s348_s9 = smov [#allocation10]   ;;  %s187_s13 = sshll.u32 %s393_s4, 4  ;;  %s188_s13 = int_to_ptr.hbm [resolvable:$true] %s187_s13 }
  0x10   :  { %116 = vmatpush.msra.mxu1 %v90_v5  ;;  %96 = vmatpush.msra.mxu0 %v89_v6  ;;  %v83_v11 = vld [vmem:[#allocation5 + $0x120] sm:$0xff]  ;;  %v82_v12 = vld [vmem:[#allocation5 + $0x118] sm:$0xff]  ;;  %v81_v13 = vld [vmem:[#allocation5 + $0x110] sm:$0xff]  ;;  %s185_s10 = sshll.u32 %s348_s9, 4  ;;  %s186_s10 = int_to_ptr.vmem [resolvable:$true] %s185_s10 }
  0x11   :  { %137 = vmatpush.msra.mxu2 %v88_v4  ;;  %v80_v14 = vld [vmem:[#allocation5 + $0x108] sm:$0xff]  ;;  %v79_v15 = vld [vmem:[#allocation5 + $0x100] sm:$0xff]  ;;  %v78_v16 = vld [vmem:[#allocation5 + $0xf8] sm:$0xff] }
  0x12   :  { %117 = vmatpush.msra.mxu1 %v87_v7  ;;  %97 = vmatpush.msra.mxu0 %v86_v8  ;;  %v77_v17 = vld [vmem:[#allocation5 + $0xf0] sm:$0xff]  ;;  %v76_v18 = vld [vmem:[#allocation5 + $0xe8] sm:$0xff]  ;;  %v75_v19 = vld [vmem:[#allocation5 + $0xe0] sm:$0xff] }
  0x13   :  { %138 = vmatpush.msra.mxu2 %v85_v9  ;;  %v74_v20 = vld [vmem:[#allocation5 + $0xd8] sm:$0xff]  ;;  %v73_v21 = vld [vmem:[#allocation5 + $0xd0] sm:$0xff]  ;;  %v72_v22 = vld [vmem:[#allocation5 + $0xc8] sm:$0xff] }
  0x14   :  { %118 = vmatpush.msra.mxu1 %v84_v10  ;;  %98 = vmatpush.msra.mxu0 %v83_v11  ;;  %v71_v23 = vld [vmem:[#allocation5 + $0xc0] sm:$0xff]  ;;  %v70_v24 = vld [vmem:[#allocation5 + $0xb8] sm:$0xff]  ;;  %v69_v25 = vld [vmem:[#allocation5 + $0xb0] sm:$0xff] }
  0x15   :  { %139 = vmatpush.msra.mxu2 %v82_v12  ;;  %v68_v26 = vld [vmem:[#allocation5 + $0xa8] sm:$0xff]  ;;  %v67_v27 = vld [vmem:[#allocation5 + $0xa0] sm:$0xff]  ;;  %v66_v28 = vld [vmem:[#allocation5 + $0x98] sm:$0xff] }
  0x16   :  { %119 = vmatpush.msra.mxu1 %v81_v13  ;;  %99 = vmatpush.msra.mxu0 %v80_v14  ;;  %v65_v29 = vld [vmem:[#allocation5 + $0x90] sm:$0xff]  ;;  %v64_v30 = vld [vmem:[#allocation5 + $0x88] sm:$0xff]  ;;  %v63_v31 = vld [vmem:[#allocation5 + $0x80] sm:$0xff] }
  0x17   :  { %140 = vmatpush.msra.mxu2 %v79_v15  ;;  %v62_v32 = vld [vmem:[#allocation5 + $0x78] sm:$0xff]  ;;  %v61_v33 = vld [vmem:[#allocation5 + $0x70] sm:$0xff]  ;;  %v60_v34 = vld [vmem:[#allocation5 + $0x68] sm:$0xff] }
  0x18   :  { %120 = vmatpush.msra.mxu1 %v78_v16  ;;  %100 = vmatpush.msra.mxu0 %v77_v17  ;;  %v59_v35 = vld [vmem:[#allocation5 + $0x60] sm:$0xff]  ;;  %v58_v36 = vld [vmem:[#allocation5 + $0x58] sm:$0xff]  ;;  %v57_v37 = vld [vmem:[#allocation5 + $0x50] sm:$0xff] }
  0x19   :  { %141 = vmatpush.msra.mxu2 %v76_v18  ;;  %v56_v38 = vld [vmem:[#allocation5 + $0x48] sm:$0xff]  ;;  %v55_v39 = vld [vmem:[#allocation5 + $0x40] sm:$0xff]  ;;  %v54_v40 = vld [vmem:[#allocation5 + $0x38] sm:$0xff] }
  0x1a   :  { %121 = vmatpush.msra.mxu1 %v75_v19  ;;  %101 = vmatpush.msra.mxu0 %v74_v20  ;;  %v53_v41 = vld [vmem:[#allocation5 + $0x30] sm:$0xff]  ;;  %v52_v42 = vld [vmem:[#allocation5 + $0x28] sm:$0xff]  ;;  %v51_v43 = vld [vmem:[#allocation5 + $0x20] sm:$0xff] }
  0x1b   :  { %142 = vmatpush.msra.mxu2 %v73_v21  ;;  %v50_v44 = vld [vmem:[#allocation5 + $0x18] sm:$0xff]  ;;  %v49_v45 = vld [vmem:[#allocation5 + $0x10] sm:$0xff]  ;;  %v48_v47 = vld [vmem:[#allocation5 + $0x8] sm:$0xff] }
  0x1c   :  { %122 = vmatpush.msra.mxu1 %v72_v22  ;;  %102 = vmatpush.msra.mxu0 %v71_v23  ;;  %v46_v46 = vld [vmem:[#allocation2] sm:$0xff]  ;;  %v47_v48 = vld [vmem:[#allocation5] sm:$0xff] }
  0x1d   :  { %143 = vmatpush.msra.mxu2 %v70_v24 }
  0x1e   :  { %123 = vmatpush.msra.mxu1 %v69_v25  ;;  %103 = vmatpush.msra.mxu0 %v68_v26 }
  0x1f   :  { %144 = vmatpush.msra.mxu2 %v67_v27 }
  0x20   :  { %124 = vmatpush.msra.mxu1 %v66_v28  ;;  %104 = vmatpush.msra.mxu0 %v65_v29 }
  0x21   :  { %145 = vmatpush.msra.mxu2 %v64_v30 }
  0x22   :  { %125 = vmatpush.msra.mxu1 %v63_v31  ;;  %105 = vmatpush.msra.mxu0 %v62_v32 }
  0x23   :  { %146 = vmatpush.msra.mxu2 %v61_v33 }
  0x24   :  { %126 = vmatpush.msra.mxu1 %v60_v34  ;;  %106 = vmatpush.msra.mxu0 %v59_v35 }
  0x25   :  { %147 = vmatpush.msra.mxu2 %v58_v36 }
  0x26   :  { %127 = vmatpush.msra.mxu1 %v57_v37  ;;  %107 = vmatpush.msra.mxu0 %v56_v38 }
  0x27   :  { %148 = vmatpush.msra.mxu2 %v55_v39 }
  0x28   :  { %128 = vmatpush.msra.mxu1 %v54_v40  ;;  %108 = vmatpush.msra.mxu0 %v53_v41 }
  0x29   :  { %149 = vmatpush.msra.mxu2 %v52_v42 }
  0x2a   :  { %129 = vmatpush.msra.mxu1 %v51_v43  ;;  %109 = vmatpush.msra.mxu0 %v50_v44 }
  0x2b   :  { %150 = vmatpush.msra.mxu2 %v49_v45 }
  0x2c   :  { %151 = vmatmul.f32.vlgmr.msra.gmra.mxu2 %v46_v46  ;;  %130 = vmatpush.msra.mxu1 %v48_v47 }
  0x2d   :  { %110 = vmatpush.msra.mxu0 %v47_v48  ;;  %131 = vmatmul.f32.vlgmr.msra.gmra.mxu1 %v46_v46 }
  0x2e   :  { %111 = vmatmul.f32.vlgmr.msra.gmra.mxu0 %v46_v46 }
  0xaa   :  { %v132_v49 = vpop.f32.mrf.mxu1 }
  0xab   :  { %156 = vst [vmem:[#allocation8] sm:$0xff] %v132_v49  ;;  %v112_v50 = vpop.f32.mrf.mxu0 }
  0xac   :  { %155 = vst [vmem:[#allocation7] sm:$0xff] %v112_v50  ;;  %179 = dma.vmem_to_hbm [thread:$0]  %s175_s1, 128, %s177_s29, [#allocation9]  }
  0xad   :  { %168 = dma.vmem_to_hbm [thread:$0]  %s164_s5, 128, %s166_s8, [#allocation4]  }
  0xaf   :  { %v152_v51 = vpop.f32.mrf.mxu2 }
  0xb0   :  { %157 = vst [vmem:[#allocation10] sm:$0xff] %v152_v51 }
  0xb1   :  { %190 = dma.vmem_to_hbm [thread:$0]  %s186_s10, 128, %s188_s13, [#allocation9]  }
  0xb2   :  { %338 = dma.done.wait [#allocation4], 128  }
  0xb3   :  { %339 = vsyncadd [#allocation4], 4294967168 }
  0xb4   :  { %340 = dma.done.wait [#allocation9], 256  }
  0xb5   :  { %341 = vsyncadd [#allocation9], 4294967040 }
  0xb6   :  { %203 = vsyncpa [#allocation3], 1 }
  0xb7   :  { %204 = vsyncpa [#allocation6], 1 }
  0xb8   :  { %205 = vsyncpa [#allocation4], 1 }
  0xb9   :  { %206 = vsyncpa [#allocation9], 1 }

</bundles_post_ra>
